<compile_context>
chip_gen: v7x
topology: tpu7x:2x2x1
jax: 0.10.0
libtpu: 0.0.40
codegen_flags: <defaults>
</compile_context>

<pallas_src>
import functools

import jax
import jax.numpy as jnp
from jax.experimental import pallas as pl
from jax.experimental.pallas import tpu as pltpu


def _focal_loss_kernel(logits_ref, targets_ref, weight_ref, out_ref, *,
                       gamma, n_total, tile_n):
    # Current tile (streamed in input dtype, cast to f32 for the math).
    logits = logits_ref[...].astype(jnp.float32)        # (tile_n, C)
    tgt = targets_ref[...]                               # (tile_n, 1) int32
    w = weight_ref[...].astype(jnp.float32)              # (1, C)

    # Numerically stable log-softmax along the class (lane) axis.
    m = jnp.max(logits, axis=-1, keepdims=True)                         # (tile_n, 1)
    shifted = logits - m                                                 # (tile_n, C)
    lse = jnp.log(jnp.sum(jnp.exp(shifted), axis=-1, keepdims=True))     # (tile_n, 1)
    log_probs = shifted - lse                                            # (tile_n, C)

    # Fused one-hot gather of weight[t]*log_softmax[t]: a single masked
    # cross-lane reduction (the one-hot row has exactly one non-zero).
    col = jax.lax.broadcasted_iota(jnp.int32, logits.shape, 1)           # (tile_n, C)
    sel = col == tgt                                                      # (tile_n, C)
    ce = -jnp.sum(jnp.where(sel, log_probs * w, 0.0),
                  axis=-1, keepdims=True)                                 # (tile_n, 1)

    pt = jnp.exp(-ce)
    one_minus_pt = 1.0 - pt

    # Integer-gamma fast path: repeated VPU multiplies instead of pow's
    # exp(gamma*log(x)) on the EUP.
    g = float(gamma)
    if g == int(g) and 0 <= int(g) <= 8:
        mod = jnp.ones_like(one_minus_pt)
        for _ in range(int(g)):
            mod = mod * one_minus_pt
    else:
        mod = one_minus_pt ** g
    focal = mod * ce                                                      # (tile_n, 1)

    # Mask rows past the true batch size (last partial tile / padding).
    row = jax.lax.broadcasted_iota(jnp.int32, focal.shape, 0)
    global_row = pl.program_id(0) * tile_n + row
    focal = jnp.where(global_row < n_total, focal, 0.0)

    # Per-tile partial sum, written as a lane-dense fully-aligned block.
    partial = jnp.sum(focal)
    out_ref[...] = jnp.broadcast_to(partial, out_ref.shape)              # (1, 8, 128)


def _choose_tile_n(n, c, itemsize):
    """~4 MiB logits tile per buffer (double-buffered ~8 MiB): safe on v5e/v6e/v7x."""
    budget = 4 * 1024 * 1024
    t = budget // max(1, c * itemsize)
    t = max(8, min(t, 1024))
    t = (t // 8) * 8
    if n <= t:
        return n          # single tile; block == full array dim is always legal
    return t


def focal_loss(logits, targets, gamma=2.0, weight=None, tile_n=None):
    """Pallas TPU focal loss.  logits: (N, C) float, targets: (N,) int."""
    n, c = logits.shape
    if weight is None:
        weight = jnp.ones((c,), dtype=jnp.float32)
    weight2d = weight.astype(jnp.float32).reshape(1, c)
    targets2d = targets.astype(jnp.int32).reshape(n, 1)

    itemsize = jnp.dtype(logits.dtype).itemsize
    if tile_n is None:
        tile_n = _choose_tile_n(n, c, itemsize)
    num_tiles = (n + tile_n - 1) // tile_n

    kernel = functools.partial(_focal_loss_kernel, gamma=float(gamma),
                               n_total=n, tile_n=tile_n)

    cost = pl.CostEstimate(
        flops=10 * n * c,                         # softmax + select + focal arithmetic
        transcendentals=n * c + 3 * n,            # exp over (N,C) + per-row log/exp
        bytes_accessed=n * c * itemsize + n * 4 + c * 4 + num_tiles * 8 * 128 * 4,
    )

    partials = pl.pallas_call(
        kernel,
        out_shape=jax.ShapeDtypeStruct((num_tiles, 8, 128), jnp.float32),
        grid=(num_tiles,),
        in_specs=[
            pl.BlockSpec((tile_n, c), lambda i: (i, 0)),   # logits tile
            pl.BlockSpec((tile_n, 1), lambda i: (i, 0)),   # targets tile
            pl.BlockSpec((1, c), lambda i: (0, 0)),        # class weights (resident)
        ],
        out_specs=pl.BlockSpec((1, 8, 128), lambda i: (i, 0, 0)),
        compiler_params=pltpu.CompilerParams(
            dimension_semantics=("parallel",),
            vmem_limit_bytes=48 * 1024 * 1024,
        ),
        cost_estimate=cost,
    )(logits, targets2d, weight2d)

    # Final reduction + mean in the wrapper (tiny: num_tiles scalars).
    return jnp.sum(partials[:, 0, 0]) / jnp.float32(n)


def _reference_focal_loss(logits, targets, gamma=2.0, weight=None):
    """Pure-JAX reference mirroring torch.nn.functional.cross_entropy path."""
    logp = jax.nn.log_softmax(logits.astype(jnp.float32), axis=-1)
    logp_t = jnp.take_along_axis(logp, targets[:, None], axis=-1)[:, 0]
    if weight is None:
        w_t = jnp.ones_like(logp_t)
    else:
        w_t = weight[targets].astype(jnp.float32)
    ce = -logp_t * w_t
    pt = jnp.exp(-ce)
    return jnp.mean((1.0 - pt) ** gamma * ce)


if __name__ == "__main__":
    key = jax.random.PRNGKey(0)
    k1, k2, k3, k4 = jax.random.split(key, 4)

    # Case 1: small shapes matching the module's typical use (batch=8, 32 classes),
    # with per-class weights to exercise the `weight` path.
    N, C = 8, 32
    logits = jax.random.normal(k1, (N, C), dtype=jnp.float32)
    targets = jax.random.randint(k2, (N,), 0, C, dtype=jnp.int32)
    weight = 0.5 + jnp.arange(C, dtype=jnp.float32) / C

    out = focal_loss(logits, targets, gamma=2.0, weight=weight)
    out = jax.block_until_ready(out)
    ref = _reference_focal_loss(logits, targets, gamma=2.0, weight=weight)
    assert jnp.allclose(out, ref, rtol=1e-5, atol=1e-5), (out, ref)

    # Case 2: exercise the multi-tile + partial-last-tile (masked) path
    # with a forced small tile size; also exercises weight=None and non-int gamma.
    N2, C2 = 200, 128
    logits2 = jax.random.normal(k3, (N2, C2), dtype=jnp.float32)
    targets2 = jax.random.randint(k4, (N2,), 0, C2, dtype=jnp.int32)

    out2 = focal_loss(logits2, targets2, gamma=1.5, weight=None, tile_n=64)
    out2 = jax.block_until_ready(out2)
    ref2 = _reference_focal_loss(logits2, targets2, gamma=1.5, weight=None)
    assert jnp.allclose(out2, ref2, rtol=1e-5, atol=1e-5), (out2, ref2)

    print("KERNEL_OK")
</pallas_src>

<mosaic_0001>
module attributes {stable_mosaic.version = 11 : i64} {
  func.func @_focal_loss_kernel(%arg0: i32, %arg1: memref<8x32xf32, #tpu.memory_space<vmem>>, %arg2: memref<8x1xi32, #tpu.memory_space<vmem>>, %arg3: memref<1x32xf32, #tpu.memory_space<vmem>>, %arg4: memref<1x8x128xf32, #tpu.memory_space<vmem>>) attributes {dimension_semantics = [#tpu.dimension_semantics<parallel>], iteration_bounds = array<i64: 1>, scalar_prefetch = 0 : i64, scratch_operands = 0 : i64, tpu.core_type = #tpu.core_type<tc>, window_params = [{transform_indices = @transform_0, window_bounds = array<i64: 8, 32>}, {transform_indices = @transform_1, window_bounds = array<i64: 8, 1>}, {pipeline_mode = #tpu.pipeline_mode<synchronous>, transform_indices = @transform_2, window_bounds = array<i64: 1, 32>}, {transform_indices = @transform_3, window_bounds = array<i64: 1, 8, 128>}]} {
    %c0 = arith.constant 0 : index
    %c0_0 = arith.constant 0 : index
    %0 = vector.load %arg1[%c0, %c0_0] : memref<8x32xf32, #tpu.memory_space<vmem>>, vector<8x32xf32>
    %c0_1 = arith.constant 0 : index
    %c0_2 = arith.constant 0 : index
    %1 = vector.load %arg2[%c0_1, %c0_2] : memref<8x1xi32, #tpu.memory_space<vmem>>, vector<8x1xi32>
    %c0_3 = arith.constant 0 : index
    %c0_4 = arith.constant 0 : index
    %2 = vector.load %arg3[%c0_3, %c0_4] : memref<1x32xf32, #tpu.memory_space<vmem>>, vector<1x32xf32>
    %cst = arith.constant dense<0xFF800000> : vector<8xf32>
    %3 = vector.multi_reduction <maximumf>, %0, %cst [1] : vector<8x32xf32> to vector<8xf32>
    %4 = vector.shape_cast %3 : vector<8xf32> to vector<8x1xf32>
    %5 = vector.broadcast %4 : vector<8x1xf32> to vector<8x32xf32>
    %6 = arith.subf %0, %5 : vector<8x32xf32>
    %7 = math.exp %6 : vector<8x32xf32>
    %cst_5 = arith.constant dense<0.000000e+00> : vector<8xf32>
    %8 = vector.multi_reduction <add>, %7, %cst_5 [1] : vector<8x32xf32> to vector<8xf32>
    %9 = vector.shape_cast %8 : vector<8xf32> to vector<8x1xf32>
    %10 = math.log %9 : vector<8x1xf32>
    %11 = vector.broadcast %10 : vector<8x1xf32> to vector<8x32xf32>
    %12 = arith.subf %6, %11 : vector<8x32xf32>
    %13 = tpu.iota {dimensions = array<i32: 1>} : vector<8x32xi32>
    %14 = vector.broadcast %1 : vector<8x1xi32> to vector<8x32xi32>
    %15 = arith.cmpi eq, %13, %14 : vector<8x32xi32>
    %16 = vector.broadcast %2 : vector<1x32xf32> to vector<8x32xf32>
    %17 = arith.mulf %12, %16 : vector<8x32xf32>
    %cst_6 = arith.constant 0.000000e+00 : f32
    %18 = vector.broadcast %cst_6 : f32 to vector<8x32xf32>
    %19 = arith.select %15, %17, %18 : vector<8x32xi1>, vector<8x32xf32>
    %cst_7 = arith.constant dense<0.000000e+00> : vector<8xf32>
    %20 = vector.multi_reduction <add>, %19, %cst_7 [1] : vector<8x32xf32> to vector<8xf32>
    %21 = vector.shape_cast %20 : vector<8xf32> to vector<8x1xf32>
    %cst_8 = arith.constant 0.000000e+00 : f32
    %22 = vector.broadcast %cst_8 : f32 to vector<8x1xf32>
    %23 = arith.subf %22, %21 : vector<8x1xf32>
    %cst_9 = arith.constant 0.000000e+00 : f32
    %24 = vector.broadcast %cst_9 : f32 to vector<8x1xf32>
    %25 = arith.subf %24, %23 : vector<8x1xf32>
    %26 = math.exp %25 : vector<8x1xf32>
    %cst_10 = arith.constant 1.000000e+00 : f32
    %27 = vector.broadcast %cst_10 : f32 to vector<8x1xf32>
    %28 = arith.subf %27, %26 : vector<8x1xf32>
    %cst_11 = arith.constant 1.000000e+00 : f32
    %29 = vector.broadcast %cst_11 : f32 to vector<8x1xf32>
    %30 = arith.mulf %29, %28 : vector<8x1xf32>
    %31 = arith.mulf %30, %28 : vector<8x1xf32>
    %32 = arith.mulf %31, %23 : vector<8x1xf32>
    %33 = tpu.iota {dimensions = array<i32: 0>} : vector<8x1xi32>
    %c8_i32 = arith.constant 8 : i32
    %34 = arith.muli %arg0, %c8_i32 : i32
    %35 = vector.broadcast %34 : i32 to vector<8x1xi32>
    %36 = arith.addi %35, %33 : vector<8x1xi32>
    %c8_i32_12 = arith.constant 8 : i32
    %37 = vector.broadcast %c8_i32_12 : i32 to vector<8x1xi32>
    %38 = arith.cmpi slt, %36, %37 : vector<8x1xi32>
    %cst_13 = arith.constant 0.000000e+00 : f32
    %39 = vector.broadcast %cst_13 : f32 to vector<8x1xf32>
    %40 = arith.select %38, %32, %39 : vector<8x1xi1>, vector<8x1xf32>
    %41 = vector.shape_cast %40 : vector<8x1xf32> to vector<1x8x1xf32>
    %cst_14 = arith.constant dense<0.000000e+00> : vector<1xf32>
    %42 = vector.multi_reduction <add>, %41, %cst_14 [1, 2] : vector<1x8x1xf32> to vector<1xf32>
    %43 = vector.shape_cast %42 : vector<1xf32> to vector<1x1x1xf32>
    %44 = vector.extract %43[0, 0, 0] : f32 from vector<1x1x1xf32>
    %45 = vector.broadcast %44 : f32 to vector<1x8x128xf32>
    %c0_15 = arith.constant 0 : index
    %c0_16 = arith.constant 0 : index
    %c0_17 = arith.constant 0 : index
    %46 = vector.load %arg4[%c0_15, %c0_16, %c0_17] : memref<1x8x128xf32, #tpu.memory_space<vmem>>, vector<1x8x128xf32>
    tpu.vector_store %arg4[%c0_15, %c0_16, %c0_17], %45 {strides = array<i32>} : memref<1x8x128xf32, #tpu.memory_space<vmem>>, vector<1x8x128xf32>,
    return
  }
  func.func @transform_0(%arg0: i32) -> (i32, i32) {
    %c0_i32 = arith.constant 0 : i32
    %c0_i32_0 = arith.constant 0 : i32
    return %arg0, %c0_i32 : i32, i32
  }
  func.func @transform_1(%arg0: i32) -> (i32, i32) {
    %c0_i32 = arith.constant 0 : i32
    %c0_i32_0 = arith.constant 0 : i32
    return %arg0, %c0_i32 : i32, i32
  }
  func.func @transform_2(%arg0: i32) -> (i32, i32) {
    %c0_i32 = arith.constant 0 : i32
    %c0_i32_0 = arith.constant 0 : i32
    %c0_i32_1 = arith.constant 0 : i32
    return %c0_i32, %c0_i32_0 : i32, i32
  }
  func.func @transform_3(%arg0: i32) -> (i32, i32, i32) {
    %c0_i32 = arith.constant 0 : i32
    %c0_i32_0 = arith.constant 0 : i32
    %c0_i32_1 = arith.constant 0 : i32
    return %arg0, %c0_i32, %c0_i32_0 : i32, i32, i32
  }
}

</mosaic_0001>

<bundles_post_ra>
// kernel: tpu_custom_call.1
= control target key start
LH: loop header
LB: loop body
LE: loop exit
PB: predicated region body
PF: predicated region fallthrough
CT: control target
= control target key end

     0   :  { %vm18_vm0 = vcmask 261120   ;;  %s172_s0 = inlined_call_operand.vmem [shape: f32[8,32], index: 0, kind: input, shape index: {}]   ;;  %s173_s1 = inlined_call_operand.vmem [shape: s32[8,1], index: 1, kind: input, shape index: {}]   ;;  %s174_s2 = inlined_call_operand.vmem [shape: f32[1,32], index: 2, kind: input, shape index: {}]   ;;  %s175_s3 = inlined_call_operand.hbm [shape: f32[1,8,128], index: 3, kind: output, shape index: {}]  }
   0x1   :  { %v15_v0 = vld [vmem:[%s172_s0] sm:$0xff] }
   0x2   :  { %8 = vsyncpa [#allocation3], 0  ;;  %v19_v1 = vsel %vm18_vm0, %v15_v0, -inf  ;;  %v16_v2 = vld [vmem:[%s173_s1] sm:$0xff]  ;;  %v126_v3 = vmov 0   ;;  %v31_v10 = vlaneseq  ;;  %vm62_vm2 = vcmask 7168  }
   0x3   :  { %20 = vmax.xlane.f32.xlu0 %v19_v1  ;;  %94 = vset.pattern.permute.xlu1 %v126_v3  ;;  %v89_v15 = vld [vmem:[%s174_s2] ss:$0 sm:$0xff]  ;;  %s127_s2 = smov [#allocation2]  }
   0x4   :  { %95 = vset.pattern.permute.xlu0 %v126_v3  ;;  %34 = vperm.xlu1 %94, %v16_v2   ;;  %v32_v12 = vand.u32 127, %v31_v10  ;;  %s81_s16 = sshll.u32 %s127_s2, 4  ;;  %s82_s16 = int_to_ptr.vmem [resolvable:$true] %s81_s16 }
   0x5   :  { %s102_s18 = scalar_lea.vmem %s82_s16, 128  ;;  %p107_p1 = scmp.lt.s32.totalorder %s82_s16, %s82_s16 }
   0x6   :  { %p103_p0 = scmp.ne.s32.totalorder %s82_s16, %s102_s18  ;;  %p108_p2 = scmp.lt.s32.totalorder %s102_s18, %s102_s18 }
   0x8   :  { %p109_p3 = por %p108_p2, %p107_p1 }
   0xa   :  { %p110_p4 = pnand %p109_p3, %p103_p0 }
  0x83   :  { %v35_v14 = vpop.permute.xlu1 %34 }
  0x84   :  { %vm36_vm1 = vcmp.eq.s32.totalorder %v32_v12, %v35_v14 }
  0x90   :  { %v21_v4 = vpop.xlane.xlu0 %20 }
  0x91   :  { %v22_v5 = vsub.f32 %v15_v0, %v21_v4 }
  0x93   :  { %v23_v6 = vmul.f32 1.442695, %v22_v5 }
  0x95   :  { %96 = vpow2.f32 %v23_v6 }
  0x9f   :  { %v97_v7 = vpop.eup %96 }
  0xa0   :  { %v25_v8 = vsel %vm18_vm0, %v97_v7, 0.0 }
  0xa1   :  { %26 = vadd.xlane.f32.xlu0 %v25_v8 }
 0x12e   :  { %v27_v9 = vpop.xlane.xlu0 %26 }
 0x12f   :  { %98 = vlog2.f32 %v27_v9 }
 0x139   :  { %v99_v11 = vpop.eup %98 }
 0x13a   :  { %v29_v13 = vmul.f32 0.6931472, %v99_v11 }
 0x13c   :  { %v30_v16 = vsub.f32 %v22_v5, %v29_v13 }
 0x13e   :  { %v43_v17 = vmul.f32 %v89_v15, %v30_v16 }
 0x140   :  { %v44_v18 = vsel %vm36_vm1, %v43_v17, 0.0 }
 0x141   :  { %v45_v19 = vsel %vm18_vm0, %v44_v18, 0.0 }
 0x142   :  { %46 = vadd.xlane.f32.xlu1 %v45_v19 }
 0x1cf   :  { %v47_v20 = vpop.xlane.xlu1 %46 }
 0x1d0   :  { %v48_v21 = vsub.f32 0.0, %v47_v20 }
 0x1d2   :  { %v49_v22 = vsub.f32 0.0, %v48_v21 }
 0x1d4   :  { %v50_v23 = vmul.f32 1.442695, %v49_v22 }
 0x1d6   :  { %100 = vpow2.f32 %v50_v23 }
 0x1e0   :  { %v101_v24 = vpop.eup %100 }
 0x1e1   :  { %v52_v25 = vsub.f32 1.0, %v101_v24 }
 0x1e3   :  { %v53_v26 = vmul.f32 %v52_v25, %v52_v25 }
 0x1e5   :  { %v54_v27 = vmul.f32 %v53_v26, %v48_v21 }
 0x1e7   :  { %v63_v28 = vsel %vm62_vm2, %v54_v27, 0.0 }
 0x1e8   :  { %64 = vadd.xlane.f32.xlu0 %v63_v28 }
 0x275   :  { %v65_v29 = vpop.xlane.xlu0 %64 }
 0x276   :  { %v66_v30 = vrot.slane %v65_v29, 4 }
 0x278   :  { %v67_v31 = vadd.f32 %v66_v30, %v65_v29 }
 0x27a   :  { %v68_v32 = vrot.slane %v67_v31, 2 }
 0x27c   :  { %v69_v33 = vadd.f32 %v68_v32, %v67_v31 }
 0x27e   :  { %v70_v34 = vrot.slane %v69_v33, 1 }
 0x280   :  { %v71_v35 = vadd.f32 %v70_v34, %v69_v33 }
 0x282   :  { %90 = vpush %v71_v35 }
 0x2b3   :  { %s91_s17 = spop %90 }
 0x2b4   :  { %v73_v36 = vstv %s91_s17 }
 0x2b5   :  { %74 = vst [vmem:[#allocation2] sm:$0xff] %v73_v36 }
 0x2b6   :  { %113 = shalt.err (!%p110_p4)
}
 0x2b7   :  { %s114_s21 = scalar_lea.hbm %s175_s3, 128 }
 0x2b8   :  { %p115_p5 = scmp.ne.s32.totalorder %s175_s3, %s114_s21  ;;  %p118_p6 = scmp.lt.u32.totalorder %s114_s21, %s175_s3 }
 0x2ba   :  { %p120_p7 = pnand %p118_p6, %p115_p5 }
 0x2bc   :  { %123 = shalt.err (!%p120_p7)
}
 0x2bd   :  { %84 = dma.vmem_to_hbm [thread:$0]  %s82_s16, 128, %s175_s3, [#allocation3]  }
 0x2be   :  { %124 = dma.done.wait [#allocation3], 128  }
 0x2bf   :  { %125 = vsyncadd [#allocation3], 4294967168 }
 0x2c0   :  { %88 = vsyncpa [#allocation3], 1 }

</bundles_post_ra>
